<compile_context>
chip_gen: v5e
topology: v5e:2x2
jax: 0.10.0
libtpu: 0.0.40
codegen_flags: <defaults>
</compile_context>

<pallas_src>
import functools

import jax
import jax.numpy as jnp
from jax.experimental import pallas as pl
from jax.experimental.pallas import tpu as pltpu


# --------------------------------------------------------------------------- kernel

def _make_sdpa_kernel(write_attn):
    def kernel(q_ref, k_ref, v_ref, *out_refs):
        ctx_ref = out_refs[0]
        q = q_ref[0]   # (TQ, D)
        k = k_ref[0]   # (Sk, D)
        v = v_ref[0]   # (Sk, Dv)

        # scores = Q @ K^T / 1 — contract last dims directly (no XLU transpose of K).
        scores = jax.lax.dot_general(
            q, k,
            dimension_numbers=(((1,), (1,)), ((), ())),
            preferred_element_type=jnp.float32,
            precision=jax.lax.Precision.HIGHEST,
        )

        # masked_fill_(scores == 0, -1e9)  (faithful to the module's exact-zero test)
        scores = jnp.where(scores == 0.0, jnp.float32(-1e9), scores)

        # Numerically stable softmax over the last dim (matches nn.Softmax(dim=-1)).
        m = jnp.max(scores, axis=-1, keepdims=True)
        e = jnp.exp(scores - m)
        denom = jnp.sum(e, axis=-1, keepdims=True)
        # EUP approximate reciprocal + one Newton step: divide leaves the VPU,
        # accuracy stays at f32 round-off.
        inv = pl.reciprocal(denom, approx=True)
        inv = inv * (2.0 - denom * inv)
        attn = e * inv

        # context = attn @ V
        ctx = jax.lax.dot_general(
            attn, v,
            dimension_numbers=(((1,), (0,)), ((), ())),
            preferred_element_type=jnp.float32,
            precision=jax.lax.Precision.HIGHEST,
        )

        ctx_ref[0] = ctx.astype(ctx_ref.dtype)
        if write_attn:
            out_refs[1][0] = attn.astype(out_refs[1].dtype)

    return kernel


# --------------------------------------------------------------------------- sizing

def _vmem_limits():
    """Per-generation VMEM limit + tile-selection budget (bytes)."""
    try:
        phys = pltpu.get_tpu_info().vmem_capacity_bytes
    except Exception:
        phys = 64 * 1024 * 1024          # conservative fallback (v7x per-TC VMEM)
    limit = min(96 * 1024 * 1024, (phys * 3) // 4)   # ~96 MiB v5e/v6e, 48 MiB v7x
    budget = (limit * 7) // 10                        # ~70% of the scoped limit
    return limit, budget


def _choose_q_tile(sq, sk, d, dv, budget_bytes, itemsize=4):
    """Largest 128-aligned query tile whose per-step VMEM footprint fits the budget."""

    def est(t):
        dbuf = 2 * (t * d + t * dv + t * sk)   # Q, ctx, attn blocks (double-buffered)
        sbuf = sk * d + sk * dv                # K, V blocks (single-buffered)
        interm = 3 * t * sk                    # scores / e / attn live f32 intermediates
        return (dbuf + sbuf + interm) * itemsize

    if sq <= 128:
        return sq                              # block equals the full query extent

    tq = max(128, min((sq // 128) * 128, 1024))
    while tq > 128 and est(tq) > budget_bytes:
        tq -= 128
    return tq


def _kv_block_spec(block_shape, index_map):
    """K/V block spec: single-buffered (block does not change across the inner axis)."""
    try:
        return pl.BlockSpec(block_shape, index_map, pipeline_mode=pl.Buffered(1))
    except (TypeError, AttributeError):
        # Older JAX without per-operand pipeline_mode: fall back to default buffering.
        return pl.BlockSpec(block_shape, index_map)


# --------------------------------------------------------------------------- wrapper

@functools.partial(jax.jit, static_argnames=("return_attn", "attn_dtype"))
def scaled_dot_product_attention(Q, K, V, *, return_attn=True, attn_dtype=jnp.float32):
    """Q: (B, Sq, D), K: (B, Sk, D), V: (B, Sk, Dv) float32.

    Returns (context (B, Sq, Dv), attn (B, Sq, Sk)) — same as the torch module's forward.
    Set return_attn=False to skip the attn store/HBM writeback entirely, or
    attn_dtype=jnp.bfloat16 to halve it.
    """
    B, Sq, D = Q.shape
    Bk, Sk, Dk = K.shape
    Bv, Skv, Dv = V.shape
    assert Bk == B and Bv == B and Dk == D and Skv == Sk

    vmem_limit, tile_budget = _vmem_limits()
    TQ = _choose_q_tile(Sq, Sk, D, Dv, tile_budget)
    n_q = pl.cdiv(Sq, TQ)

    in_specs = [
        pl.BlockSpec((1, TQ, D), lambda b, qi: (b, qi, 0)),     # Q tile
        _kv_block_spec((1, Sk, D), lambda b, qi: (b, 0, 0)),    # K full, single-buffered
        _kv_block_spec((1, Sk, Dv), lambda b, qi: (b, 0, 0)),   # V full, single-buffered
    ]
    out_specs = [pl.BlockSpec((1, TQ, Dv), lambda b, qi: (b, qi, 0))]   # context tile
    out_shape = [jax.ShapeDtypeStruct((B, Sq, Dv), Q.dtype)]
    attn_itemsize = 0
    if return_attn:
        out_specs.append(pl.BlockSpec((1, TQ, Sk), lambda b, qi: (b, qi, 0)))
        out_shape.append(jax.ShapeDtypeStruct((B, Sq, Sk), attn_dtype))
        attn_itemsize = jnp.dtype(attn_dtype).itemsize

    grid_spec = pltpu.PrefetchScalarGridSpec(
        num_scalar_prefetch=0,
        grid=(B, n_q),
        in_specs=in_specs,
        out_specs=out_specs,
    )

    cost = pl.CostEstimate(
        flops=2 * B * Sq * Sk * (D + Dv),
        transcendentals=B * Sq * Sk,
        bytes_accessed=4 * B * (Sq * D + Sk * D + Sk * Dv + Sq * Dv)
        + attn_itemsize * B * Sq * Sk,
    )

    outs = pl.pallas_call(
        _make_sdpa_kernel(return_attn),
        out_shape=tuple(out_shape),
        grid_spec=grid_spec,
        compiler_params=pltpu.CompilerParams(
            # Batch axis parallel (megacore shards b, so each core streams unique K/V);
            # query axis arbitrary (sequential) to avoid duplicating K/V reads on v7x.
            dimension_semantics=("parallel", "arbitrary"),
            vmem_limit_bytes=int(vmem_limit),
        ),
        cost_estimate=cost,
    )(Q, K, V)

    if return_attn:
        context, attn = outs
        return context, attn
    return outs[0], None


# --------------------------------------------------------------------------- reference

def _reference(Q, K, V):
    scores = jnp.einsum("bqd,bkd->bqk", Q, K,
                        precision=jax.lax.Precision.HIGHEST) / 1.0
    scores = jnp.where(scores == 0.0, -1e9, scores)
    attn = jax.nn.softmax(scores, axis=-1)
    context = jnp.einsum("bqk,bkd->bqd", attn, V,
                         precision=jax.lax.Precision.HIGHEST)
    return context, attn


if __name__ == "__main__":
    key = jax.random.PRNGKey(0)
    kq, kk, kv = jax.random.split(key, 3)

    B, S, D = 2, 8, 32
    Q = jax.random.normal(kq, (B, S, D), dtype=jnp.float32)
    K = jax.random.normal(kk, (B, S, D), dtype=jnp.float32)
    V = jax.random.normal(kv, (B, S, D), dtype=jnp.float32)

    context, attn = scaled_dot_product_attention(Q, K, V)
    jax.block_until_ready(context)
    jax.block_until_ready(attn)

    ref_ctx, ref_attn = _reference(Q, K, V)
    assert jnp.allclose(context, ref_ctx, atol=1e-4, rtol=1e-4), "context mismatch"
    assert jnp.allclose(attn, ref_attn, atol=1e-4, rtol=1e-4), "attn mismatch"

    # context-only variant (skips the attn store entirely) must still match.
    ctx_only, _ = scaled_dot_product_attention(Q, K, V, return_attn=False)
    jax.block_until_ready(ctx_only)
    assert jnp.allclose(ctx_only, ref_ctx, atol=1e-4, rtol=1e-4), "context-only mismatch"

    print("KERNEL_OK")
</pallas_src>

<mosaic_0001>
module attributes {stable_mosaic.version = 11 : i64} {
  func.func @kernel(%arg0: i32, %arg1: i32, %arg2: memref<1x8x32xf32, #tpu.memory_space<vmem>>, %arg3: memref<1x8x32xf32, #tpu.memory_space<vmem>>, %arg4: memref<1x8x32xf32, #tpu.memory_space<vmem>>, %arg5: memref<1x8x32xf32, #tpu.memory_space<vmem>>, %arg6: memref<1x8x8xf32, #tpu.memory_space<vmem>>) attributes {dimension_semantics = [#tpu.dimension_semantics<parallel>, #tpu.dimension_semantics<arbitrary>], iteration_bounds = array<i64: 2, 1>, scalar_prefetch = 0 : i64, scratch_operands = 0 : i64, tpu.core_type = #tpu.core_type<tc>, window_params = [{transform_indices = @transform_0, window_bounds = array<i64: 1, 8, 32>}, {pipeline_mode = #tpu.pipeline_mode<synchronous>, transform_indices = @transform_1, window_bounds = array<i64: 1, 8, 32>}, {pipeline_mode = #tpu.pipeline_mode<synchronous>, transform_indices = @transform_2, window_bounds = array<i64: 1, 8, 32>}, {transform_indices = @transform_3, window_bounds = array<i64: 1, 8, 32>}, {transform_indices = @transform_4, window_bounds = array<i64: 1, 8, 8>}]} {
    %c0 = arith.constant 0 : index
    %c0_0 = arith.constant 0 : index
    %c0_1 = arith.constant 0 : index
    %0 = vector.load %arg2[%c0, %c0_0, %c0_1] : memref<1x8x32xf32, #tpu.memory_space<vmem>>, vector<1x8x32xf32>
    %1 = vector.shape_cast %0 : vector<1x8x32xf32> to vector<8x32xf32>
    %c0_2 = arith.constant 0 : index
    %c0_3 = arith.constant 0 : index
    %c0_4 = arith.constant 0 : index
    %2 = vector.load %arg3[%c0_2, %c0_3, %c0_4] : memref<1x8x32xf32, #tpu.memory_space<vmem>>, vector<1x8x32xf32>
    %3 = vector.shape_cast %2 : vector<1x8x32xf32> to vector<8x32xf32>
    %c0_5 = arith.constant 0 : index
    %c0_6 = arith.constant 0 : index
    %c0_7 = arith.constant 0 : index
    %4 = vector.load %arg4[%c0_5, %c0_6, %c0_7] : memref<1x8x32xf32, #tpu.memory_space<vmem>>, vector<1x8x32xf32>
    %5 = vector.shape_cast %4 : vector<1x8x32xf32> to vector<8x32xf32>
    %cst = arith.constant dense<0.000000e+00> : vector<8x8xf32>
    %6 = tpu.matmul %1, %3, %cst {dimension_numbers = #tpu.dot_dimension_numbers<[1], [1], [0], [0], [0, 0, 1, 0], [], []>, precision = #tpu.contract_precision<fp32>} : vector<8x32xf32>, vector<8x32xf32>, vector<8x8xf32> -> vector<8x8xf32>
    %cst_8 = arith.constant 0.000000e+00 : f32
    %7 = vector.broadcast %cst_8 : f32 to vector<8x8xf32>
    %8 = arith.cmpf oeq, %6, %7 : vector<8x8xf32>
    %cst_9 = arith.constant -1.000000e+09 : f32
    %9 = vector.broadcast %cst_9 : f32 to vector<8x8xf32>
    %10 = arith.select %8, %9, %6 : vector<8x8xi1>, vector<8x8xf32>
    %cst_10 = arith.constant dense<0xFF800000> : vector<8xf32>
    %11 = vector.multi_reduction <maximumf>, %10, %cst_10 [1] : vector<8x8xf32> to vector<8xf32>
    %12 = vector.shape_cast %11 : vector<8xf32> to vector<8x1xf32>
    %13 = vector.broadcast %12 : vector<8x1xf32> to vector<8x8xf32>
    %14 = arith.subf %10, %13 : vector<8x8xf32>
    %15 = math.exp %14 : vector<8x8xf32>
    %cst_11 = arith.constant dense<0.000000e+00> : vector<8xf32>
    %16 = vector.multi_reduction <add>, %15, %cst_11 [1] : vector<8x8xf32> to vector<8xf32>
    %17 = vector.shape_cast %16 : vector<8xf32> to vector<8x1xf32>
    %18 = tpu.reciprocal %17 {approx = true} : vector<8x1xf32> -> vector<8x1xf32>
    %19 = arith.mulf %17, %18 : vector<8x1xf32>
    %cst_12 = arith.constant 2.000000e+00 : f32
    %20 = vector.broadcast %cst_12 : f32 to vector<8x1xf32>
    %21 = arith.subf %20, %19 : vector<8x1xf32>
    %22 = arith.mulf %18, %21 : vector<8x1xf32>
    %23 = vector.broadcast %22 : vector<8x1xf32> to vector<8x8xf32>
    %24 = arith.mulf %15, %23 : vector<8x8xf32>
    %cst_13 = arith.constant dense<0.000000e+00> : vector<8x32xf32>
    %25 = tpu.matmul %24, %5, %cst_13 {dimension_numbers = #tpu.dot_dimension_numbers<[1], [0], [0], [1], [0, 0, 1, 1], [], []>, precision = #tpu.contract_precision<fp32>} : vector<8x8xf32>, vector<8x32xf32>, vector<8x32xf32> -> vector<8x32xf32>
    %c0_14 = arith.constant 0 : index
    %c0_15 = arith.constant 0 : index
    %c0_16 = arith.constant 0 : index
    %26 = vector.load %arg5[%c0_14, %c0_15, %c0_16] : memref<1x8x32xf32, #tpu.memory_space<vmem>>, vector<1x8x32xf32>
    %27 = vector.shape_cast %26 : vector<1x8x32xf32> to vector<8x32xf32>
    %28 = vector.shape_cast %25 : vector<8x32xf32> to vector<1x8x32xf32>
    tpu.vector_store %arg5[%c0_14, %c0_15, %c0_16], %28 {strides = array<i32>} : memref<1x8x32xf32, #tpu.memory_space<vmem>>, vector<1x8x32xf32>,
    %c0_17 = arith.constant 0 : index
    %c0_18 = arith.constant 0 : index
    %c0_19 = arith.constant 0 : index
    %29 = vector.load %arg6[%c0_17, %c0_18, %c0_19] : memref<1x8x8xf32, #tpu.memory_space<vmem>>, vector<1x8x8xf32>
    %30 = vector.shape_cast %29 : vector<1x8x8xf32> to vector<8x8xf32>
    %31 = vector.shape_cast %24 : vector<8x8xf32> to vector<1x8x8xf32>
    tpu.vector_store %arg6[%c0_17, %c0_18, %c0_19], %31 {strides = array<i32>} : memref<1x8x8xf32, #tpu.memory_space<vmem>>, vector<1x8x8xf32>,
    return
  }
  func.func @transform_0(%arg0: i32, %arg1: i32) -> (i32, i32, i32) {
    %c0_i32 = arith.constant 0 : i32
    %c0_i32_0 = arith.constant 0 : i32
    return %arg0, %arg1, %c0_i32 : i32, i32, i32
  }
  func.func @transform_1(%arg0: i32, %arg1: i32) -> (i32, i32, i32) {
    %c0_i32 = arith.constant 0 : i32
    %c0_i32_0 = arith.constant 0 : i32
    %c0_i32_1 = arith.constant 0 : i32
    return %arg0, %c0_i32, %c0_i32_0 : i32, i32, i32
  }
  func.func @transform_2(%arg0: i32, %arg1: i32) -> (i32, i32, i32) {
    %c0_i32 = arith.constant 0 : i32
    %c0_i32_0 = arith.constant 0 : i32
    %c0_i32_1 = arith.constant 0 : i32
    return %arg0, %c0_i32, %c0_i32_0 : i32, i32, i32
  }
  func.func @transform_3(%arg0: i32, %arg1: i32) -> (i32, i32, i32) {
    %c0_i32 = arith.constant 0 : i32
    %c0_i32_0 = arith.constant 0 : i32
    return %arg0, %arg1, %c0_i32 : i32, i32, i32
  }
  func.func @transform_4(%arg0: i32, %arg1: i32) -> (i32, i32, i32) {
    %c0_i32 = arith.constant 0 : i32
    %c0_i32_0 = arith.constant 0 : i32
    return %arg0, %arg1, %c0_i32 : i32, i32, i32
  }
}

</mosaic_0001>

<bundles_post_ra>
// kernel: scaled_dot_product_attention.1
= control target key start
LH: loop header
LB: loop body
LE: loop exit
PB: predicated region body
PF: predicated region fallthrough
CT: control target
= control target key end

     0   :  { %10 = vsyncpa [#allocation3], 0  ;;  %s1329_s0 = inlined_call_operand.hbm [shape: f32[2,8,32], index: 0, kind: input, shape index: {}]   ;;  %s1330_s1 = inlined_call_operand.hbm [shape: f32[2,8,32], index: 1, kind: input, shape index: {}]   ;;  %s1331_s2 = inlined_call_operand.hbm [shape: f32[2,8,32], index: 2, kind: input, shape index: {}]   ;;  %s1332_s3 = inlined_call_operand.hbm [shape: f32[2,8,32], index: 3, kind: output, shape index: {0}]   ;;  %s1333_s4 = inlined_call_operand.hbm [shape: f32[2,8,8], index: 4, kind: output, shape index: {1}]  }
   0x1   :  { %12 = vsyncpa [#allocation3 + $0x1], 0 }
   0x2   :  { %13 = vsyncpa [#allocation6], 0 }
   0x3   :  { %14 = vsyncpa [#allocation4], 0 }
   0x4   :  { %16 = vsyncpa [#allocation4 + $0x1], 0 }
   0x5   :  { %17 = vsyncpa [#allocation10], 0 }
   0x6   :  { %19 = vsyncpa [#allocation10 + $0x1], 0  ;;  %s1125_s15 = smov 0   ;;  %s1127_s16 = smov 0  }
   0x7   :  { %s1129_s17 = smov 0   ;;  %s1131_s18 = smov 0  }
   0x8   :  { %s1133_s19 = smov 0   ;;  %s1135_s20 = smov 0  }
   0x9 LB: > { %s786_s21 = sadd.s32 4294967295, %s1096_s20   ;;  %s787_s22 = sadd.s32 4294967294, %s1096_s20   ;;  %s1096_s20 = sphi %s1135_s20, %s25_s20   ;;  %s1092_s19 = sphi %s1133_s19, %s1343_s19   ;;  %s1088_s18 = sphi %s1131_s18, %s1342_s18   ;;  %s1084_s17 = sphi %s1129_s17, %s1341_s17   ;;  %s1080_s16 = sphi %s1127_s16, %s1340_s16   ;;  %s1076_s15 = sphi %s1125_s15, %s1339_s15  }
   0xa   : > { %p59_p0 = scmp.ne.s32.totalorder %s1080_s16, %s1076_s15  ;;  %p60_p1 = scmp.eq.s32.totalorder %s786_s21, 0 }
   0xb   : > { %p143_p2 = scmp.eq.s32.totalorder %s787_s22, 1  ;;  %p788_p4 = scmp.ge.s32.totalorder %s1096_s20, 1 }
   0xc   : > { %p1159_p3 = por %p60_p1, %p59_p0  ;;  %p178_p6 = scmp.lt.s32.totalorder %s1096_s20, 3 }
   0xd   : > { %p1164_p5 = por %p143_p2, %p59_p0  ;;  %s1169_s25 = sshll.u32 %s1088_s18, 3 }
   0xe   : > { %p1171_p7 = pnand %p788_p4, %p178_p6  ;;  %s190_s29 = scalar_lea.hbm %s1330_s1, %s1169_s25 }
   0xf   : > { %s192_s30 = sshll.u32 %s190_s29, 4  ;;  %s1098_s5 = smov [#allocation5]   ;;  %s193_s30 = int_to_ptr.hbm [resolvable:$true] %s192_s30 }
  0x10   : > { %s194_s6 = sshll.u32 %s1098_s5, 4  ;;  %p814_p8 = pneg %p1171_p7  ;;  %s195_s6 = int_to_ptr.vmem [resolvable:$true] %s194_s6 }
  0x11   : > { %p791_p9 = scmp.ge.s32.totalorder %s1096_s20, 2  ;;  %s204_s10 = scalar_lea.hbm %s1331_s2, %s1169_s25 }
  0x12   : > { %p1184_p10 = pnand %p814_p8, %p1159_p3  ;;  %s1192_s11 = sshll.u32 %s204_s10, 4  ;;  %s207_s11 = int_to_ptr.hbm [resolvable:$true] %s1192_s11 }
  0x13   : > { %s888_s12 = sshra.s32 %s193_s30, 4  ;;  %s895_s22 = scalar_lea.hbm %s1330_s1, 16  ;;  %s889_s12 = int_to_ptr.hbm [resolvable:$true] %s888_s12 }
  0x14   : > { %s890_s13 = scalar_lea.hbm %s889_s12, 8  ;;  %p892_p12 = pneg %p1184_p10 }
  0x15   : > { %p891_p11 = scmp.ne.s32.totalorder %s889_s12, %s890_s13  ;;  %p896_p1 = scmp.lt.s32.totalorder %s889_s12, %s1330_s1 }
  0x16   : > { %p897_p2 = scmp.lt.s32.totalorder %s895_s22, %s890_s13 }
  0x17   : > { %p893_p13 = pnand %p892_p12, %p891_p11 }
  0x18   : > { %p898_p4 = por %p897_p2, %p896_p1 }
  0x19   : > { %p894_p0 = pneg %p893_p13 }
  0x1b   : > { %p899_p6 = pnand %p898_p4, %p894_p0 }
  0x1d   : > { %902 = shalt.err (!%p899_p6)
}
  0x1e   : > { %817 = dma.hbm_to_vmem [thread:$0]  (!%p1184_p10), %s193_s30, 128, %s195_s6, [#allocation6]  }
  0x1f   : > { %s1099_s29 = smov [#allocation7]   ;;  %s918_s8 = sshra.s32 %s207_s11, 4  ;;  %s919_s8 = int_to_ptr.hbm [resolvable:$true] %s918_s8 }
  0x20   : > { %s208_s5 = sshll.u32 %s1099_s29, 4  ;;  %s920_s9 = scalar_lea.hbm %s919_s8, 8  ;;  %s209_s5 = int_to_ptr.vmem [resolvable:$true] %s208_s5 }
  0x21   : > { %p921_p8 = scmp.ne.s32.totalorder %s919_s8, %s920_s9  ;;  %s925_s13 = scalar_lea.hbm %s1331_s2, 16 }
  0x22   : > { %p926_p0 = scmp.lt.s32.totalorder %s919_s8, %s1331_s2  ;;  %p927_p1 = scmp.lt.s32.totalorder %s925_s13, %s920_s9 }
  0x23   : > { %p923_p11 = pnand %p921_p8, %p892_p12 }
  0x24   : > { %p928_p2 = por %p927_p1, %p926_p0 }
  0x25   : > { %p924_p13 = pneg %p923_p11 }
  0x27   : > { %p929_p4 = pnand %p928_p2, %p924_p13 }
  0x29   : > { %932 = shalt.err (!%p929_p4)
}
  0x2a   : > { %820 = dma.hbm_to_vmem [thread:$0]  (!%p1184_p10), %s207_s11, 128, %s209_s5, [#allocation6]  }
  0x2b   : > { %p137_p12 = scmp.eq.s32.totalorder %s786_s21, 1  ;;  %s37_s30 = sadd.s32 1, %s1092_s19 }
  0x2c   : > { %p39_p6 = scmp.ge.s32.totalorder %s37_s30, 2  ;;  %s46_s6 = sadd.s32 1, %s1084_s17 }
  0x2d   : > { %p53_p8 = scmp.ne.s32.totalorder %s1084_s17, %s1080_s16  ;;  %p54_p11 = scmp.eq.s32.totalorder %s1096_s20, 0 }
  0x2e   : > { %s1345_s30 = smov (%p39_p6, %s37_s30), 0  ;;  %p832_p0 = scmp.lt.s32.totalorder %s1096_s20, 2 }
  0x2f   : > { %p1232_p13 = por %p137_p12, %p53_p8  ;;  %s41_s22 = ssub.s32 %s1092_s19, %s1345_s30 }
  0x30   : > { %s219_s27 = sand.u32 1, %s1084_s17   ;;  %p44_p10 = scmp.eq.s32.totalorder %s41_s22, 0 }
  0x31   : > { %p55_p1 = por %p54_p11, %p53_p8  ;;  %s792_s11 = sshll.u32 %s219_s27, 3 }
  0x32   : > { %s793_s21 = sshll.u32 %s1092_s19, 3  ;;  %s223_s10 = scalar_lea.vmem [#allocation2], %s792_s11 }
  0x33   : > { %s1242_s28 = scalar_select %p44_p10, %s1084_s17, %s46_s6  }
  0x34   : > { %s228_s8 = scalar_lea.hbm %s1329_s0, %s793_s21  ;;  %s232_s12 = sshll.u32 %s223_s10, 4  ;;  %s233_s12 = int_to_ptr.vmem [resolvable:$true] %s232_s12 }
  0x35   : > { %s230_s9 = sshll.u32 %s228_s8, 4  ;;  %p822_p2 = pnand %p832_p0, %p55_p1  ;;  %s231_s9 = int_to_ptr.hbm [resolvable:$true] %s230_s9 }
  0x36   : > { %s220_s13 = scalar_lea.sflag [#allocation3], %s219_s27  ;;  %241 = sbr.rel (%p1171_p7) target bundleno = 633 (0x279), region = 32 }
  0x37   : > { %824 = dma.hbm_to_vmem [thread:$0]  (!%p822_p2), %s231_s9, 128, %s233_s12, %s220_s13  }
  0x38   : > { %s1252_s14 = sand.u32 (!%p1171_p7), 1, %s1080_s16  }
  0x39   : > { %s1255_s18 = sshll.u32 (!%p1171_p7), %s1252_s14, 3  ;;  %s244_s6 = scalar_lea.sflag (!%p1171_p7), [#allocation3], %s1252_s14 }
  0x3a   : > { %s247_s22 = scalar_lea.vmem (!%p1171_p7), [#allocation2], %s1255_s18 }
  0x3b   : > { %1059 = dma.done.wait (%p1159_p3), %s244_s6, 128  }
  0x3c   : > { %1061 = vsyncadd (%p1159_p3), %s244_s6, 4294967168 }
  0x3d   : > { %1063 = dma.done.wait (%p1159_p3), [#allocation6], 256  }
  0x3e   : > { %1065 = vsyncadd (%p1159_p3), [#allocation6], 4294967040  ;;  %vm291_vm0 = vcmask 261120   ;;  %v289_v0 = vld [vmem:[#allocation5] sm:$0xff]  ;;  %v288_v1 = vld [vmem:[%s247_s22] sm:$0xff]  ;;  %vm446_vm1 = vcmask 64512   ;;  %s644_s11 = scalar_lea.hbm %s1333_s4, %s1169_s25 }
  0x3f   : > { %v296_v2 = vsel %vm291_vm0, %v289_v0, 0  ;;  %v293_v3 = vsel %vm291_vm0, %v288_v1, 0  ;;  %v290_v32 = vld [vmem:[#allocation7] sm:$0xff]  ;;  %s287_s23 = scalar_lea.vmem [#allocation9], %s1255_s18  ;;  %s648_s29 = sshll.u32 %s644_s11, 4  ;;  %s649_s29 = int_to_ptr.hbm [resolvable:$true] %s648_s29 }
  0x40   : > { %v313_v4 = vand.u32 4294901760, %v296_v2  ;;  %v315_v5 = vand.u32 4294901760, %v293_v3  ;;  %v479_v33 = vand.u32 4294901760, %v290_v32  ;;  %s646_s21 = sshll.u32 %s287_s23, 4  ;;  %s618_s5 = scalar_lea.sflag [#allocation10], %s1252_s14  ;;  %s647_s21 = int_to_ptr.vmem [resolvable:$true] %s646_s21 }
  0x41   : > { %s992_s8 = sshra.s32 %s649_s29, 4  ;;  %s998_s13 = scalar_lea.hbm %s1333_s4, 16  ;;  %s993_s8 = int_to_ptr.hbm [resolvable:$true] %s992_s8 }
  0x42   : > { %v340_v6 = vsub.f32 %v296_v2, %v313_v4  ;;  %314 = vmatpush.xpose.msra.mxu0 %v313_v4  ;;  %390 = vmatpush.xpose.msra.mxu3 %v313_v4  ;;  %v316_v7 = vsub.f32 %v293_v3, %v315_v5  ;;  %v506_v34 = vsub.f32 %v290_v32, %v479_v33  ;;  %s994_s9 = scalar_lea.hbm %s993_s8, 8  ;;  %p999_p12 = scmp.lt.s32.totalorder %s993_s8, %s1333_s4 }
  0x43   : > { %p995_p3 = scmp.ne.s32.totalorder %s993_s8, %s994_s9  ;;  %p1000_p6 = scmp.lt.s32.totalorder %s998_s13, %s994_s9 }
  0x44   : > { %367 = vmatpush.xpose.msra.mxu2 %v340_v6  ;;  %v341_v8 = vand.u32 4294901760, %v340_v6  ;;  %v317_v9 = vand.u32 4294901760, %v316_v7  ;;  %v507_v35 = vand.u32 4294901760, %v506_v34 }
  0x45   : > { %p996_p7 = pnand %p995_p3, %p1232_p13  ;;  %p1001_p8 = por %p1000_p6, %p999_p12 }
  0x46   : > { %v342_v10 = vsub.f32 %v340_v6, %v341_v8  ;;  %v318_v11 = vsub.f32 %v316_v7, %v317_v9  ;;  %394 = vmatmul.f32.vlgmr.msra.gmra.mxu3 %v317_v9  ;;  %416 = vmatpush.xpose.msrb.mxu0 %v341_v8  ;;  %v508_v36 = vsub.f32 %v506_v34, %v507_v35 }
  0x47   : > { %370 = vmatmul.f32.vlgmr.msra.gmra.mxu2 %v316_v7  ;;  %p997_p4 = pneg %p996_p7 }
  0x48   : > { %v343_v12 = vand.u32 4294901760, %v342_v10  ;;  %v319_v13 = vand.u32 4294901760, %v318_v11  ;;  %480 = vmatpush.msrb.mxu2 %v479_v33  ;;  %v509_v37 = vand.u32 4294901760, %v508_v36 }
  0x49   : > { %p1002_p11 = pnand %p1001_p8, %p997_p4 }
  0x4a   : > { %344 = vmatpush.xpose.msra.mxu1 %v343_v12  ;;  %320 = vmatmul.f32.vlgmr.msra.gmra.mxu0 %v319_v13 }
  0x4b   : > { %533 = vmatpush.msra.mxu0 %v506_v34  ;;  %582 = vmatpush.msra.mxu2 %v507_v35 }
  0x4c   : > { %510 = vmatpush.msrb.mxu3 %v509_v37 }
  0x4d   : > { %346 = vmatmul.f32.vlgmr.msra.gmra.mxu1 %v315_v5 }
  0x4e   : > { %438 = vmatpush.xpose.msrb.mxu1 %v313_v4  ;;  %604 = vmatpush.msra.mxu3 %v479_v33 }
  0x52   : > { %418 = vmatmul.f32.vlgmr.msrb.gmra.mxu0 %v315_v5  ;;  %556 = vmatpush.msra.mxu1 %v479_v33 }
  0x55   : > { %440 = vmatmul.f32.vlgmr.msrb.gmra.mxu1 %v315_v5 }
  0xc7   : > { %v321_v14 = vpop.f32.mrf.mxu0 }
  0xc9   : > { %v395_v18 = vpop.f32.mrf.mxu3 }
  0xca   : > { %v347_v15 = vpop.f32.mrf.mxu1  ;;  %v371_v16 = vpop.f32.mrf.mxu2 }
  0xcb   : > { %v348_v17 = vadd.f32 %v347_v15, %v321_v14 }
  0xcd   : > { %v372_v19 = vadd.f32 %v371_v16, %v348_v17 }
  0xcf   : > { %v396_v20 = vadd.f32 %v395_v18, %v372_v19  ;;  %v419_v21 = vpop.f32.mrf.mxu0 }
  0xd1   : > { %v420_v22 = vadd.f32 %v419_v21, %v396_v20 }
  0xd2   : > { %v441_v23 = vpop.f32.mrf.mxu1 }
  0xd3   : > { %v442_v24 = vadd.f32 %v441_v23, %v420_v22 }
  0xd5   : > { %vm444_vm2 = vcmp.eq.f32.partialorder %v442_v24, 0.0 }
  0xd6   : > { %v445_v25 = vsel %vm444_vm2, -1e+09, %v442_v24 }
  0xd7   : > { %v447_v26 = vsel %vm446_vm1, %v445_v25, -inf }
  0xd8   : > { %448 = vmax.xlane.f32.xlu0 %v447_v26 }
 0x14b   : > { %v449_v27 = vpop.xlane.xlu0 %448 }
 0x14c   : > { %v450_v28 = vsub.f32 %v445_v25, %v449_v27 }
 0x14e   : > { %v451_v29 = vmul.f32 1.442695, %v450_v28 }
 0x150   : > { %884 = vpow2.f32 %v451_v29 }
 0x156   : > { %v885_v30 = vpop.eup %884 }
 0x157   : > { %v453_v31 = vsel %vm446_vm1, %v885_v30, 0.0 }
 0x158   : > { %454 = vadd.xlane.f32.xlu0 %v453_v31 }
 0x1cb   : > { %v455_v38 = vpop.xlane.xlu0 %454 }
 0x1cc   : > { %886 = vrcp.f32 %v455_v38 }
 0x1d2   : > { %v887_v39 = vpop.eup %886 }
 0x1d3   : > { %v457_v40 = vmul.f32 %v887_v39, %v455_v38 }
 0x1d5   : > { %v458_v41 = vsub.f32 2.0, %v457_v40 }
 0x1d7   : > { %v459_v42 = vmul.f32 %v887_v39, %v458_v41 }
 0x1d9   : > { %v460_v43 = vmul.f32 %v885_v30, %v459_v42 }
 0x1db   : > { %v462_v44 = vsel %vm446_vm1, %v460_v43, 0  ;;  %611 = vst.msk [vmem:[%s287_s23] sm:$0xff] %vm446_vm1, %v460_v43 }
 0x1dc   : > { %v481_v45 = vand.u32 4294901760, %v462_v44 }
 0x1de   : > { %512 = vmatmul.f32.vlgmr.msrb.gmra.mxu3 %v481_v45  ;;  %v482_v46 = vsub.f32 %v462_v44, %v481_v45 }
 0x1e0   : > { %536 = vmatmul.f32.vlgmr.msra.gmra.mxu0 %v482_v46  ;;  %v483_v47 = vand.u32 4294901760, %v482_v46 }
 0x1e2   : > { %560 = vmatmul.f32.vlgmr.msra.gmra.mxu1 %v483_v47  ;;  %v484_v48 = vsub.f32 %v482_v46, %v483_v47 }
 0x1e4   : > { %v485_v49 = vand.u32 4294901760, %v484_v48 }
 0x1e6   : > { %486 = vmatmul.f32.vlgmr.msrb.gmra.mxu2 %v485_v49  ;;  %606 = vmatmul.f32.vlgmr.msra.gmra.mxu3 %v481_v45 }
 0x1ee   : > { %584 = vmatmul.f32.vlgmr.msra.gmra.mxu2 %v481_v45 }
 0x1ef   : > { %1005 = shalt.err (!%p1002_p11)
}
 0x1f0   : > { %811 = dma.vmem_to_hbm [thread:$0]  (%p1232_p13), %s647_s21, 128, %s649_s29, %s618_s5  }
 0x1f1   : > { %s629_s27 = scalar_lea.hbm %s1332_s3, %s1169_s25  ;;  %s280_s11 = scalar_lea.vmem [#allocation8], %s1255_s18 }
 0x1f2   : > { %s631_s8 = sshll.u32 %s280_s11, 4  ;;  %s633_s9 = sshll.u32 %s629_s27, 4  ;;  %s632_s8 = int_to_ptr.vmem [resolvable:$true] %s631_s8  ;;  %s634_s9 = int_to_ptr.hbm [resolvable:$true] %s633_s9 }
 0x1f3   : > { %s613_s21 = scalar_lea.sflag [#allocation4], %s1252_s14  ;;  %s1020_s29 = sshra.s32 %s634_s9, 4  ;;  %s1021_s29 = int_to_ptr.hbm [resolvable:$true] %s1020_s29 }
 0x1f4   : > { %s1022_s5 = scalar_lea.hbm %s1021_s29, 8  ;;  %s1026_s18 = scalar_lea.hbm %s1332_s3, 16 }
 0x1f5   : > { %p1023_p0 = scmp.ne.s32.totalorder %s1021_s29, %s1022_s5  ;;  %p1027_p2 = scmp.lt.s32.totalorder %s1021_s29, %s1332_s3 }
 0x1f6   : > { %p1028_p3 = scmp.lt.s32.totalorder %s1026_s18, %s1022_s5 }
 0x1f7   : > { %p1024_p10 = pnand %p1023_p0, %p1232_p13 }
 0x1f8   : > { %p1029_p7 = por %p1028_p3, %p1027_p2 }
 0x1f9   : > { %p1025_p1 = pneg %p1024_p10 }
 0x1fb   : > { %p1030_p4 = pnand %p1029_p7, %p1025_p1 }
 0x25d   : > { %v537_v53 = vpop.f32.mrf.mxu0 }
 0x25f   : > { %v561_v55 = vpop.f32.mrf.mxu1 }
 0x261   : > { %v513_v50 = vpop.f32.mrf.mxu3 }
 0x269   : > { %v487_v51 = vpop.f32.mrf.mxu2  ;;  %v607_v59 = vpop.f32.mrf.mxu3 }
 0x26a   : > { %v514_v52 = vadd.f32 %v513_v50, %v487_v51 }
 0x26c   : > { %v538_v54 = vadd.f32 %v537_v53, %v514_v52 }
 0x26e   : > { %v562_v56 = vadd.f32 %v561_v55, %v538_v54 }
 0x271   : > { %v585_v57 = vpop.f32.mrf.mxu2 }
 0x272   : > { %v586_v58 = vadd.f32 %v585_v57, %v562_v56 }
 0x274   : > { %v608_v60 = vadd.f32 %v607_v59, %v586_v58 }
 0x276   : > { %610 = vst.msk [vmem:[%s280_s11] sm:$0xff] %vm291_vm0, %v608_v60 }
 0x277   : > { %1033 = shalt.err (!%p1030_p4)
}
 0x278   : > { %810 = dma.vmem_to_hbm [thread:$0]  (%p1232_p13), %s632_s8, 128, %s634_s9, %s613_s21  }
 0x279 PF: > { %s660_s14 = sand.u32 1, %s1076_s15   ;;  %p826_p12 = pnand %p791_p9, %p1164_p5 }
 0x27a   : > { %s661_s6 = scalar_lea.sflag [#allocation4], %s660_s14 }
 0x27b   : > { %p827_p6 = pneg %p826_p12 }
 0x27d   : > { %1067 = dma.done.wait (%p827_p6), %s661_s6, 128  }
 0x27e   : > { %1069 = vsyncadd (%p827_p6), %s661_s6, 4294967168  ;;  %s671_s22 = scalar_lea.sflag [#allocation10], %s660_s14 }
 0x27f   : > { %1071 = dma.done.wait (%p827_p6), %s671_s22, 128  }
 0x280   : > { %1073 = vsyncadd (%p827_p6), %s671_s22, 4294967168  ;;  %s25_s20 = sadd.s32 1, %s1096_s20   ;;  %s1339_s15 = smov %s1080_s16 }
 0x281   : > { %p22_p8 = scmp.ge.s32.totalorder %s25_s20, 4   ;;  %s1340_s16 = smov %s1084_s17 }
 0x282   : > { %s1341_s17 = smov %s1242_s28  ;;  %s1342_s18 = smov %s1092_s19 }
 0x283   : > { %s1343_s19 = smov %s1345_s30  ;;  %24 = sbr.rel (!%p22_p8) target bundleno = 9 (0x9), region = 104 }
 0x288   :  { %677 = vsyncpa [#allocation3], 1 }
 0x289   :  { %679 = vsyncpa [#allocation3 + $0x1], 1 }
 0x28a   :  { %680 = vsyncpa [#allocation6], 1 }
 0x28b   :  { %681 = vsyncpa [#allocation4], 1 }
 0x28c   :  { %683 = vsyncpa [#allocation4 + $0x1], 1 }
 0x28d   :  { %684 = vsyncpa [#allocation10], 1 }
 0x28e   :  { %686 = vsyncpa [#allocation10 + $0x1], 1 }

</bundles_post_ra>
